<compile_context>
chip_gen: v6e
topology: v6e:2x2x1
jax: 0.10.0
libtpu: 0.0.40
codegen_flags: <defaults>
</compile_context>

<pallas_src>
import jax
import jax.numpy as jnp
from jax.experimental import pallas as pl
from jax.experimental.pallas import tpu as pltpu

HIDDEN = 256
MAX_TILE_B = 1024  # rows per grid step; multiple of 256, sweepable.


def value_kernel(x_ref, w1_ref, b1_ref, w2_ref, b2_ref, out_ref):
    # fc_s on the MXU: obs tile cast to bf16 in-kernel (VPU), f32 accumulation.
    x = x_ref[...].astype(jnp.bfloat16)                           # (tile_b, D)
    h = jnp.dot(x, w1_ref[...], preferred_element_type=jnp.float32)
    h = jnp.maximum(h + b1_ref[...], 0.0)                         # (tile_b, 256) f32

    # fc_v: 256-long dot per row as VPU mul + XLU lane reduction (transpose-free,
    # f32, keeps the MXU free; flop count here is trivial).
    v = jnp.sum(h * w2_ref[...], axis=-1, keepdims=True)          # (tile_b, 1) f32
    out_ref[...] = jnp.maximum(v + b2_ref[0], 0.0)


def _round_up(x, m):
    return ((x + m - 1) // m) * m


def _pick_tile_b(B):
    if B <= 256:
        return B  # single tile; block shape equals the full array dims.
    # >= 2 tiles (so the "parallel" axis can shard across v7x's two TCs);
    # rows a multiple of 256 to fill the v6e/v7x MXU, capped at MAX_TILE_B.
    return min(MAX_TILE_B, _round_up(pl.cdiv(B, 2), 256))


def prepare_params(w1, b1, w2, b2):
    """One-time conversion of fc_s / fc_v params to kernel-ready dtype/layout."""
    assert w1.shape[1] == HIDDEN and b1.shape == (HIDDEN,)
    assert w2.shape == (HIDDEN, 1) and b2.shape == (1,)
    return (
        jnp.asarray(w1, jnp.bfloat16),                     # (D, 256)   MXU operand
        jnp.asarray(b1, jnp.float32).reshape(1, HIDDEN),   # (1, 256)
        jnp.asarray(w2, jnp.float32).reshape(1, HIDDEN),   # (1, 256)   VPU row
        jnp.asarray(b2, jnp.float32).reshape(1),           # (1,)       SMEM scalar
    )


def value_forward(obs, params, *, tile_b=None):
    """obs: (B, obs_dim) f32, params from prepare_params -> (B, 1) f32."""
    w1_bf, b1_row, w2_row, b2_s = params
    B, D = obs.shape
    assert w1_bf.shape == (D, HIDDEN)

    if tile_b is None:
        tile_b = _pick_tile_b(B)
    tile_b = min(tile_b, B)
    n_tiles = pl.cdiv(B, tile_b)

    return pl.pallas_call(
        value_kernel,
        out_shape=jax.ShapeDtypeStruct((B, 1), jnp.float32),
        grid=(n_tiles,),
        in_specs=[
            pl.BlockSpec((tile_b, D), lambda i: (i, 0)),        # obs tile (f32; cast in kernel)
            pl.BlockSpec((D, HIDDEN), lambda i: (0, 0)),        # W1 (VMEM-resident)
            pl.BlockSpec((1, HIDDEN), lambda i: (0, 0)),        # b1 (resident)
            pl.BlockSpec((1, HIDDEN), lambda i: (0, 0)),        # W2 row (resident)
            pl.BlockSpec(memory_space=pltpu.MemorySpace.SMEM),  # b2 scalar
        ],
        out_specs=pl.BlockSpec((tile_b, 1), lambda i: (i, 0)),
        compiler_params=pltpu.CompilerParams(
            dimension_semantics=("parallel",),
            vmem_limit_bytes=32 * 1024 * 1024,  # safe on v7x's 64 MiB VMEM
        ),
    )(obs, w1_bf, b1_row, w2_row, b2_s)


def init_params(key, obs_dim):
    """Deterministic init mimicking PyTorch Linear default (uniform +-1/sqrt(fan_in))."""
    k1, k2, k3, k4 = jax.random.split(key, 4)
    lim1 = 1.0 / jnp.sqrt(jnp.float32(obs_dim))
    lim2 = 1.0 / jnp.sqrt(jnp.float32(HIDDEN))
    w1 = jax.random.uniform(k1, (obs_dim, HIDDEN), jnp.float32, -lim1, lim1)
    b1 = jax.random.uniform(k2, (HIDDEN,), jnp.float32, -lim1, lim1)
    w2 = jax.random.uniform(k3, (HIDDEN, 1), jnp.float32, -lim2, lim2)
    b2 = jax.random.uniform(k4, (1,), jnp.float32, -lim2, lim2)
    return w1, b1, w2, b2


if __name__ == "__main__":
    key = jax.random.PRNGKey(0)
    k_obs, k_params = jax.random.split(key)

    batch, obs_dim = 8, 32
    obs = jax.random.normal(k_obs, (batch, obs_dim), jnp.float32)
    w1, b1, w2, b2 = init_params(k_params, obs_dim)
    params = prepare_params(w1, b1, w2, b2)   # hoisted out of the per-call path

    v = value_forward(obs, params)
    jax.block_until_ready(v)
    assert v.shape == (batch, 1)

    # Pure-JAX reference mirroring the kernel numerics: bf16 MXU operands with
    # f32 accumulation for fc_s, pure f32 for fc_v.
    h_ref = jnp.maximum(
        jnp.dot(obs.astype(jnp.bfloat16), w1.astype(jnp.bfloat16),
                preferred_element_type=jnp.float32) + b1, 0.0)
    ref = jnp.maximum(h_ref @ w2 + b2, 0.0)
    err = jnp.max(jnp.abs(v - ref))
    assert jnp.allclose(v, ref, atol=1e-3, rtol=1e-3), f"max abs err = {err}"

    print("KERNEL_OK")
</pallas_src>

<mosaic_0001>
module attributes {stable_mosaic.version = 11 : i64} {
  func.func @value_kernel(%arg0: i32, %arg1: memref<8x32xf32, #tpu.memory_space<vmem>>, %arg2: memref<32x256xbf16, #tpu.memory_space<vmem>>, %arg3: memref<1x256xf32, #tpu.memory_space<vmem>>, %arg4: memref<1x256xf32, #tpu.memory_space<vmem>>, %arg5: memref<1xf32, #tpu.memory_space<smem>>, %arg6: memref<8x1xf32, #tpu.memory_space<vmem>>) attributes {dimension_semantics = [#tpu.dimension_semantics<parallel>], iteration_bounds = array<i64: 1>, scalar_prefetch = 0 : i64, scratch_operands = 0 : i64, tpu.core_type = #tpu.core_type<tc>, window_params = [{transform_indices = @transform_0, window_bounds = array<i64: 8, 32>}, {pipeline_mode = #tpu.pipeline_mode<synchronous>, transform_indices = @transform_1, window_bounds = array<i64: 32, 256>}, {pipeline_mode = #tpu.pipeline_mode<synchronous>, transform_indices = @transform_2, window_bounds = array<i64: 1, 256>}, {pipeline_mode = #tpu.pipeline_mode<synchronous>, transform_indices = @transform_3, window_bounds = array<i64: 1, 256>}, {transform_indices = @transform_4, window_bounds = array<i64: 1>}, {transform_indices = @transform_5, window_bounds = array<i64: 8, 1>}]} {
    %c0 = arith.constant 0 : index
    %c0_0 = arith.constant 0 : index
    %0 = vector.load %arg1[%c0, %c0_0] : memref<8x32xf32, #tpu.memory_space<vmem>>, vector<8x32xf32>
    %1 = arith.truncf %0 : vector<8x32xf32> to vector<8x32xbf16>
    %c0_1 = arith.constant 0 : index
    %c0_2 = arith.constant 0 : index
    %2 = vector.load %arg2[%c0_1, %c0_2] : memref<32x256xbf16, #tpu.memory_space<vmem>>, vector<32x256xbf16>
    %cst = arith.constant dense<0.000000e+00> : vector<8x256xf32>
    %3 = tpu.matmul %1, %2, %cst {dimension_numbers = #tpu.dot_dimension_numbers<[1], [0], [0], [1], [0, 0, 1, 1], [], []>} : vector<8x32xbf16>, vector<32x256xbf16>, vector<8x256xf32> -> vector<8x256xf32>
    %c0_3 = arith.constant 0 : index
    %c0_4 = arith.constant 0 : index
    %4 = vector.load %arg3[%c0_3, %c0_4] : memref<1x256xf32, #tpu.memory_space<vmem>>, vector<1x256xf32>
    %5 = vector.broadcast %4 : vector<1x256xf32> to vector<8x256xf32>
    %6 = arith.addf %3, %5 : vector<8x256xf32>
    %cst_5 = arith.constant 0.000000e+00 : f32
    %7 = vector.broadcast %cst_5 : f32 to vector<8x256xf32>
    %8 = arith.maximumf %6, %7 : vector<8x256xf32>
    %c0_6 = arith.constant 0 : index
    %c0_7 = arith.constant 0 : index
    %9 = vector.load %arg4[%c0_6, %c0_7] : memref<1x256xf32, #tpu.memory_space<vmem>>, vector<1x256xf32>
    %10 = vector.broadcast %9 : vector<1x256xf32> to vector<8x256xf32>
    %11 = arith.mulf %8, %10 : vector<8x256xf32>
    %cst_8 = arith.constant dense<0.000000e+00> : vector<8xf32>
    %12 = vector.multi_reduction <add>, %11, %cst_8 [1] : vector<8x256xf32> to vector<8xf32>
    %13 = vector.shape_cast %12 : vector<8xf32> to vector<8x1xf32>
    %c0_9 = arith.constant 0 : index
    %14 = memref.load %arg5[%c0_9] : memref<1xf32, #tpu.memory_space<smem>>
    %15 = vector.broadcast %14 : f32 to vector<8x1xf32>
    %16 = arith.addf %13, %15 : vector<8x1xf32>
    %cst_10 = arith.constant 0.000000e+00 : f32
    %17 = vector.broadcast %cst_10 : f32 to vector<8x1xf32>
    %18 = arith.maximumf %16, %17 : vector<8x1xf32>
    %c0_11 = arith.constant 0 : index
    %c0_12 = arith.constant 0 : index
    %19 = vector.load %arg6[%c0_11, %c0_12] : memref<8x1xf32, #tpu.memory_space<vmem>>, vector<8x1xf32>
    tpu.vector_store %arg6[%c0_11, %c0_12], %18 {strides = array<i32>} : memref<8x1xf32, #tpu.memory_space<vmem>>, vector<8x1xf32>,
    return
  }
  func.func @transform_0(%arg0: i32) -> (i32, i32) {
    %c0_i32 = arith.constant 0 : i32
    %c0_i32_0 = arith.constant 0 : i32
    return %arg0, %c0_i32 : i32, i32
  }
  func.func @transform_1(%arg0: i32) -> (i32, i32) {
    %c0_i32 = arith.constant 0 : i32
    %c0_i32_0 = arith.constant 0 : i32
    %c0_i32_1 = arith.constant 0 : i32
    return %c0_i32, %c0_i32_0 : i32, i32
  }
  func.func @transform_2(%arg0: i32) -> (i32, i32) {
    %c0_i32 = arith.constant 0 : i32
    %c0_i32_0 = arith.constant 0 : i32
    %c0_i32_1 = arith.constant 0 : i32
    return %c0_i32, %c0_i32_0 : i32, i32
  }
  func.func @transform_3(%arg0: i32) -> (i32, i32) {
    %c0_i32 = arith.constant 0 : i32
    %c0_i32_0 = arith.constant 0 : i32
    %c0_i32_1 = arith.constant 0 : i32
    return %c0_i32, %c0_i32_0 : i32, i32
  }
  func.func @transform_4(%arg0: i32) -> i32 {
    %c0_i32 = arith.constant 0 : i32
    %c0_i32_0 = arith.constant 0 : i32
    return %c0_i32 : i32
  }
  func.func @transform_5(%arg0: i32) -> (i32, i32) {
    %c0_i32 = arith.constant 0 : i32
    %c0_i32_0 = arith.constant 0 : i32
    return %arg0, %c0_i32 : i32, i32
  }
}

</mosaic_0001>

<bundles_post_ra>
// kernel: tpu_custom_call.1
= control target key start
LH: loop header
LB: loop body
LE: loop exit
PB: predicated region body
PF: predicated region fallthrough
CT: control target
= control target key end

     0   :  { %11 = vsyncpa [#allocation4], 0  ;;  %s275_s0 = inlined_call_operand.hbm [shape: f32[8,32], index: 0, kind: input, shape index: {}]   ;;  %s276_s1 = inlined_call_operand.hbm [shape: bf16[32,256], index: 1, kind: input, shape index: {}]   ;;  %s277_s2 = inlined_call_operand.vmem [shape: f32[1,256], index: 2, kind: input, shape index: {}]   ;;  %s278_s3 = inlined_call_operand.vmem [shape: f32[1,256], index: 3, kind: input, shape index: {}]   ;;  %s279_s4 = inlined_call_operand.<no memory space> [shape: f32[1], index: 4, kind: input, shape index: {}]   ;;  %s280_s5 = inlined_call_operand.vmem [shape: f32[8,1], index: 5, kind: output, shape index: {}]  }
   0x1   :  { %12 = vsyncpa [#allocation6], 0  ;;  %s222_s18 = smov [#allocation3]   ;;  %s223_s20 = smov [#allocation5]  }
   0x2   :  { %s19_s19 = sshll.u32 %s222_s18, 4  ;;  %s28_s21 = sshll.u32 %s223_s20, 4  ;;  %s20_s19 = int_to_ptr.vmem [resolvable:$true] %s19_s19  ;;  %s29_s21 = int_to_ptr.vmem [resolvable:$true] %s28_s21 }
   0x3   :  { %s186_s22 = scalar_lea.vmem %s20_s19, 128  ;;  %p191_p1 = scmp.lt.s32.totalorder %s20_s19, %s20_s19 }
   0x4   :  { %p187_p0 = scmp.ne.s32.totalorder %s20_s19, %s186_s22  ;;  %p192_p2 = scmp.lt.s32.totalorder %s186_s22, %s186_s22 }
   0x6   :  { %p193_p3 = por %p192_p2, %p191_p1 }
   0x8   :  { %p194_p4 = pnand %p193_p3, %p187_p0 }
   0xa   :  { %197 = shalt.err (!%p194_p4)
}
   0xb   :  { %22 = dma.hbm_to_vmem [thread:$0]  %s275_s0, 128, %s20_s19, [#allocation4]  }
   0xc   :  { %s206_s25 = scalar_lea.vmem %s29_s21, 512  ;;  %p211_p6 = scmp.lt.s32.totalorder %s29_s21, %s29_s21 }
   0xd   :  { %p207_p5 = scmp.ne.s32.totalorder %s29_s21, %s206_s25  ;;  %p212_p7 = scmp.lt.s32.totalorder %s206_s25, %s206_s25 }
   0xf   :  { %p213_p8 = por %p212_p7, %p211_p6 }
  0x11   :  { %p214_p9 = pnand %p213_p8, %p207_p5 }
  0x13   :  { %217 = shalt.err (!%p214_p9)
}
  0x14   :  { %s224_s26 = smov 128   ;;  %s225_s27 = smov 8  }
  0x15   :  { %34 = dma.hbm_to_vmem [thread:$0]  %s276_s1, 512, %s29_s21, [#allocation6], %s224_s26, %s224_s26, %s225_s27  }
  0x16   :  { %218 = dma.done.wait [#allocation4], 128  }
  0x17   :  { %219 = vsyncadd [#allocation4], 4294967168 }
  0x18   :  { %220 = dma.done.wait [#allocation6], 512  }
  0x19   :  { %221 = vsyncadd [#allocation6], 4294966784  ;;  %v226_v0 = vmov 0   ;;  %v172_v1 = vld [vmem:[#allocation5 + $0x14] ss:$8 sps:$4 sm:$0xff]   ;;  %vm86_vm0 = vcmask 261120   ;;  %v56_v7 = vlaneseq  ;;  %v151_v28 = vstv %s279_s4 }
  0x1a   :  { %122 = vmatprep.mubr.bf16.mxu0 %v226_v0  ;;  %v174_v2 = vld [vmem:[#allocation5 + $0x10] ss:$8 sps:$4 sm:$0xff]   ;;  %102 = vmatprep.subr.bf16.mxu0 %v172_v1  ;;  %v175_v3 = vld [vmem:[#allocation5 + $0x4] ss:$8 sps:$4 sm:$0xff]   ;;  %v177_v4 = vld [vmem:[#allocation5] ss:$8 sps:$4 sm:$0xff]  }
  0x1b   :  { %103 = vmatpush1.bf16.msra.mxu0 %v174_v2  ;;  %v48_v5 = vld [vmem:[#allocation3] sm:$0xff]  ;;  %v57_v8 = vshrl.u32 %v56_v7, 7  ;;  %vm154_vm1 = vcmask 7168  }
  0x1c   :  { %104 = vmatprep.subr.bf16.mxu0 %v175_v3  ;;  %v49_v6 = vpack.c.bf16 %v48_v5, %v48_v5  ;;  %v54_v10 = vld [vmem:[%s277_s2] sm:$0x3] }
  0x1d   :  { %v58_v9 = vsub.s32 0, %v57_v8  ;;  %v62_v11 = vsub.s32 1, %v57_v8  ;;  %v133_v15 = vld [vmem:[%s278_s3] sm:$0x3] }
  0x1f   :  { %105 = vmatpush1.bf16.msra.mxu0 %v177_v4  ;;  %v59_v12 = vrot.slane %v54_v10, %v58_v9  ;;  %v63_v13 = vrot.slane %v54_v10, %v62_v11  ;;  %v138_v20 = vrot.slane %v133_v15, %v58_v9  ;;  %v142_v21 = vrot.slane %v133_v15, %v62_v11 }
  0x22   :  { %166 = vmatmul.mubr.msk.bf16.vlgmr.msra.gmra.mxu0 %vm86_vm0, %v49_v6 }
  0xe2   :  { %v124_v14 = vpop.f32.mrf.mxu0 }
  0xe3   :  { %v125_v16 = vadd.f32 %v124_v14, %v59_v12 }
  0xe4   :  { %v126_v17 = vpop.f32.mrf.mxu0 }
  0xe5   :  { %v131_v18 = vmax.f32 %v125_v16, 0.0  ;;  %v127_v19 = vadd.f32 %v126_v17, %v63_v13 }
  0xe6   :  { %v128_v22 = vpop.f32.mrf.mxu0 }
  0xe7   :  { %v132_v23 = vmax.f32 %v127_v19, 0.0  ;;  %v145_v25 = vmul.f32 %v138_v20, %v131_v18 }
  0xe8   :  { %v129_v24 = vpop.f32.mrf.mxu0 }
  0xe9   :  { %v146_v26 = vmul.f32 %v142_v21, %v132_v23 }
  0xeb   :  { %v147_v27 = vadd.f32 %v146_v26, %v145_v25 }
  0xed   :  { %148 = vadd.xlane.f32.xlu0 %v147_v27 }
 0x176   :  { %v149_v29 = vpop.xlane.xlu0 %148 }
 0x177   :  { %v152_v30 = vadd.f32 %v151_v28, %v149_v29 }
 0x179   :  { %v153_v31 = vmax.f32 %v152_v30, 0.0 }
 0x17b   :  { %155 = vst.msk [vmem:[%s280_s5] sm:$0xff] %vm154_vm1, %v153_v31 }
 0x17c   :  { %160 = vsyncpa [#allocation4], 1 }
 0x17d   :  { %161 = vsyncpa [#allocation6], 1 }

</bundles_post_ra>
